<compile_context>
chip_gen: v7x
topology: tpu7x:2x2x1
jax: 0.10.0
libtpu: 0.0.40
codegen_flags: <defaults>
</compile_context>

<pallas_src>
import functools

import jax
import jax.numpy as jnp
from jax.experimental import pallas as pl
from jax.experimental.pallas import tpu as pltpu


def convgru_kernel(xh_ref, h_ref, w_ref, b_ref, out_ref, *,
                   H, Wp, K, Cp, Ch, TB):
    """One grid step = TB batch elements.

    xh_ref : (TB, Cp, Hp*Wp + 2p)  bf16   padded x||h, flattened per batch
    h_ref  : (TB, Ch, H*Wp)        f32    previous hidden state (W padded)
    w_ref  : (4*Ch, K*K*Cp)        bf16   packed block weight matrix
    b_ref  : (4, Ch, 1|H*Wp)       f32    per-channel (or full-plane) biases
    out_ref: (TB, Ch, H*Wp)               new hidden state (W padded)
    """
    HWp = H * Wp
    w = w_ref[...]                                  # hoisted, reused by all TB
    b_r, b_z, b_nx, b_nh = b_ref[0], b_ref[1], b_ref[2], b_ref[3]

    for b in range(TB):                             # static, small (<=8)
        xh = xh_ref[b]                              # (Cp, Wflat), one load
        # One contiguous lane-slice per tap, shared by all six convolutions.
        cols = [xh[:, ky * Wp + kx: ky * Wp + kx + HWp]
                for ky in range(K) for kx in range(K)]
        im2col = jnp.concatenate(cols, axis=0)      # (K*K*Cp, HWp), bf16
        # Single fused MXU matmul for all gates, f32 accumulation.
        gates = jnp.dot(w, im2col,
                        preferred_element_type=jnp.float32)   # (4*Ch, HWp)

        rt = jax.nn.sigmoid(gates[0 * Ch:1 * Ch] + b_r)
        zt = jax.nn.sigmoid(gates[1 * Ch:2 * Ch] + b_z)
        nt = jnp.tanh(gates[2 * Ch:3 * Ch] + b_nx
                      + rt * (gates[3 * Ch:4 * Ch] + b_nh))
        out_ref[b] = ((1.0 - zt) * nt + zt * h_ref[b]).astype(out_ref.dtype)


def convgru_cell(x, h, params, *, tb=None, matmul_dtype=jnp.bfloat16):
    """x: (N, Cin, H, W), h: (N, Ch, H, W) -> ht: (N, Ch, H, W)  (NCHW I/O)."""
    N, Cin, H, W = x.shape
    Ch = h.shape[1]
    K = params['wir'].shape[0]
    p = (K - 1) // 2
    Hp, Wp = H + 2 * p, W + 2 * p
    HWp = H * Wp                       # columns computed per batch element
    Wflat = Hp * Wp + 2 * p            # flattened padded plane (+ tap tail)
    C = Cin + Ch
    Cp = -(-C // 16) * 16              # sublane-aligned channel padding

    # ---- pack the six conv weights into one (4*Ch, K*K*Cp) block matrix ----
    def _t(w):                         # (K, K, In, Out) -> (K, K, Out, In)
        return jnp.transpose(w, (0, 1, 3, 2))

    zeros_x = jnp.zeros((K, K, Ch, Cin), jnp.float32)
    zeros_h = jnp.zeros((K, K, Ch, Ch), jnp.float32)
    w_tap = jnp.concatenate([
        jnp.concatenate([_t(params['wir']), _t(params['whr'])], axis=3),  # r
        jnp.concatenate([_t(params['wiz']), _t(params['whz'])], axis=3),  # z
        jnp.concatenate([_t(params['win']), zeros_h], axis=3),            # n(x)
        jnp.concatenate([zeros_x, _t(params['whn'])], axis=3),            # n(h)
    ], axis=2)                                             # (K, K, 4*Ch, C)
    w_tap = jnp.pad(w_tap, ((0, 0), (0, 0), (0, 0), (0, Cp - C)))
    w_packed = (jnp.transpose(w_tap, (2, 0, 1, 3))
                .reshape(4 * Ch, K * K * Cp).astype(matmul_dtype))

    # ---- activations: concat channels, pad, flatten per batch (glue) ----
    xh = jnp.concatenate([x, h], axis=1)                            # (N, C, H, W)
    xh = jnp.pad(xh, ((0, 0), (0, Cp - C), (0, 0), (0, 0)))         # (N, Cp, H, W)
    xh = jnp.pad(xh, ((0, 0), (0, 0), (p, p), (p, p)))              # (N, Cp, Hp, Wp)
    xh_flat = jnp.pad(xh.reshape(N, Cp, Hp * Wp),
                      ((0, 0), (0, 0), (0, 2 * p))).astype(matmul_dtype)

    h_wide = jnp.pad(h, ((0, 0), (0, 0), (0, 0), (0, Wp - W)))      # (N, Ch, H, Wp)
    h_wide = h_wide.reshape(N, Ch, HWp).astype(jnp.float32)

    # ---- biases: per-channel fast path, full planes only if provided ----
    bvec = jnp.stack([params['bir'], params['biz'], params['bi_n'],
                      jnp.zeros((Ch,), jnp.float32)], axis=0)       # (4, Ch)
    plane_keys = ('br', 'bz', 'bin', 'bhn')
    if all(params.get(k) is not None for k in plane_keys):
        planes = jnp.stack([params[k] for k in plane_keys], axis=0)  # (4,Ch,H,W)
        planes = jnp.pad(planes, ((0, 0), (0, 0), (0, 0), (0, Wp - W)))
        bias = planes.reshape(4, Ch, HWp).astype(jnp.float32) + bvec[:, :, None]
    else:
        bias = bvec[:, :, None].astype(jnp.float32)                  # (4, Ch, 1)

    # ---- batch block size: amortize per-step overhead, bound VMEM ----
    if tb is None:
        per_b = 2 * (Cp * Wflat * 2 + 2 * Ch * HWp * 4)   # double-buffered blocks
        fixed = K * K * Cp * HWp * 2 + 8 * Ch * HWp * 4   # im2col + gate temps
        tb = max(1, min(N, 8, ((8 << 20) - fixed) // max(per_b, 1)))
    tb = max(1, min(tb, N))
    while N % tb:
        tb -= 1

    kernel = functools.partial(convgru_kernel,
                               H=H, Wp=Wp, K=K, Cp=Cp, Ch=Ch, TB=tb)

    grid_spec = pltpu.PrefetchScalarGridSpec(
        num_scalar_prefetch=0,
        grid=(N // tb,),
        in_specs=[
            pl.BlockSpec((tb, Cp, Wflat), lambda g: (g, 0, 0)),   # x||h, bf16
            pl.BlockSpec((tb, Ch, HWp), lambda g: (g, 0, 0)),     # h, f32
            pl.BlockSpec((4 * Ch, K * K * Cp), lambda g: (0, 0)),  # weights
            pl.BlockSpec(bias.shape, lambda g: (0, 0, 0)),         # biases
        ],
        out_specs=pl.BlockSpec((tb, Ch, HWp), lambda g: (g, 0, 0)),
    )

    out = pl.pallas_call(
        kernel,
        out_shape=jax.ShapeDtypeStruct((N, Ch, HWp), x.dtype),
        grid_spec=grid_spec,
        compiler_params=pltpu.CompilerParams(
            dimension_semantics=("parallel",),
            vmem_limit_bytes=32 * 1024 * 1024),
    )(xh_flat, h_wide, w_packed, bias)

    # Drop the Wp-W junk columns; result is already NCHW.
    return out.reshape(N, Ch, H, Wp)[:, :, :, :W]


def convgru_ref(x, h, params):
    """Pure-JAX reference matching the PyTorch forward exactly (NCHW, f32)."""
    def conv(inp, w, bias=None):
        out = jax.lax.conv_general_dilated(
            inp, w, window_strides=(1, 1), padding='SAME',
            dimension_numbers=('NCHW', 'HWIO', 'NCHW'))
        if bias is not None:
            out = out + bias[None, :, None, None]
        return out

    def plane(name):
        pln = params.get(name)
        return 0.0 if pln is None else pln[None]   # (1, Ch, H, W)

    rt = jax.nn.sigmoid(conv(x, params['wir'], params['bir'])
                        + conv(h, params['whr']) + plane('br'))
    zt = jax.nn.sigmoid(conv(x, params['wiz'], params['biz'])
                        + conv(h, params['whz']) + plane('bz'))
    nt = jnp.tanh(conv(x, params['win'], params['bi_n']) + plane('bin')
                  + rt * (conv(h, params['whn']) + plane('bhn')))
    return (1.0 - zt) * nt + zt * h


if __name__ == "__main__":
    N, Cin, Ch, H, W, K = 2, 4, 8, 16, 16, 3   # hidden_channels must be even
    key = jax.random.PRNGKey(0)
    keys = jax.random.split(key, 16)
    s = 0.1

    params = {
        # Conv2d weights in HWIO layout; deterministic synthetic init.
        'wir': jax.random.normal(keys[0], (K, K, Cin, Ch), jnp.float32) * s,
        'whr': jax.random.normal(keys[1], (K, K, Ch, Ch), jnp.float32) * s,
        'wiz': jax.random.normal(keys[2], (K, K, Cin, Ch), jnp.float32) * s,
        'whz': jax.random.normal(keys[3], (K, K, Ch, Ch), jnp.float32) * s,
        'win': jax.random.normal(keys[4], (K, K, Cin, Ch), jnp.float32) * s,
        'whn': jax.random.normal(keys[5], (K, K, Ch, Ch), jnp.float32) * s,
        # Conv biases (Wir/Wiz/Win have bias=True; Wh* have bias=False).
        'bir': jax.random.normal(keys[6], (Ch,), jnp.float32) * s,
        'biz': jax.random.normal(keys[7], (Ch,), jnp.float32) * s,
        'bi_n': jax.random.normal(keys[8], (Ch,), jnp.float32) * s,
        # br / bz / bin / bhn omitted -> init_hidden zero-plane semantics.
    }

    x = jax.random.normal(keys[9], (N, Cin, H, W), jnp.float32)
    h = jax.random.normal(keys[10], (N, Ch, H, W), jnp.float32)

    # Case 1: default init_hidden semantics (zero additive bias planes).
    ht = jax.block_until_ready(convgru_cell(x, h, params))
    ref = convgru_ref(x, h, params)
    assert ht.shape == (N, Ch, H, W)
    err = float(jnp.max(jnp.abs(ht - ref)))
    assert jnp.allclose(ht, ref, atol=5e-2, rtol=5e-2), err   # bf16 matmuls

    # Case 2: general path with nonzero additive bias planes.
    params2 = dict(params)
    params2.update(
        br=jax.random.normal(keys[11], (Ch, H, W), jnp.float32) * s,
        bz=jax.random.normal(keys[12], (Ch, H, W), jnp.float32) * s,
        bin=jax.random.normal(keys[13], (Ch, H, W), jnp.float32) * s,
        bhn=jax.random.normal(keys[14], (Ch, H, W), jnp.float32) * s,
    )
    ht2 = jax.block_until_ready(convgru_cell(x, h, params2))
    ref2 = convgru_ref(x, h, params2)
    err2 = float(jnp.max(jnp.abs(ht2 - ref2)))
    assert jnp.allclose(ht2, ref2, atol=5e-2, rtol=5e-2), err2

    print("KERNEL_OK")
</pallas_src>

<mosaic_0001>
module attributes {stable_mosaic.version = 11 : i64} {
  func.func @convgru_kernel(%arg0: i32, %arg1: memref<2x16x326xbf16, #tpu.memory_space<vmem>>, %arg2: memref<2x8x288xf32, #tpu.memory_space<vmem>>, %arg3: memref<32x144xbf16, #tpu.memory_space<vmem>>, %arg4: memref<4x8x1xf32, #tpu.memory_space<vmem>>, %arg5: memref<2x8x288xf32, #tpu.memory_space<vmem>>) attributes {dimension_semantics = [#tpu.dimension_semantics<parallel>], iteration_bounds = array<i64: 1>, scalar_prefetch = 0 : i64, scratch_operands = 0 : i64, tpu.core_type = #tpu.core_type<tc>, window_params = [{transform_indices = @transform_0, window_bounds = array<i64: 2, 16, 326>}, {transform_indices = @transform_1, window_bounds = array<i64: 2, 8, 288>}, {pipeline_mode = #tpu.pipeline_mode<synchronous>, transform_indices = @transform_2, window_bounds = array<i64: 32, 144>}, {pipeline_mode = #tpu.pipeline_mode<synchronous>, transform_indices = @transform_3, window_bounds = array<i64: 4, 8, 1>}, {transform_indices = @transform_4, window_bounds = array<i64: 2, 8, 288>}]} {
    %c0 = arith.constant 0 : index
    %c0_0 = arith.constant 0 : index
    %0 = vector.load %arg3[%c0, %c0_0] : memref<32x144xbf16, #tpu.memory_space<vmem>>, vector<32x144xbf16>
    %c0_1 = arith.constant 0 : index
    %c0_2 = arith.constant 0 : index
    %c0_3 = arith.constant 0 : index
    %1 = vector.load %arg4[%c0_1, %c0_2, %c0_3] : memref<4x8x1xf32, #tpu.memory_space<vmem>>, vector<1x8x1xf32>
    %2 = vector.shape_cast %1 : vector<1x8x1xf32> to vector<8x1xf32>
    %c1 = arith.constant 1 : index
    %c0_4 = arith.constant 0 : index
    %c0_5 = arith.constant 0 : index
    %3 = vector.load %arg4[%c1, %c0_4, %c0_5] : memref<4x8x1xf32, #tpu.memory_space<vmem>>, vector<1x8x1xf32>
    %4 = vector.shape_cast %3 : vector<1x8x1xf32> to vector<8x1xf32>
    %c2 = arith.constant 2 : index
    %c0_6 = arith.constant 0 : index
    %c0_7 = arith.constant 0 : index
    %5 = vector.load %arg4[%c2, %c0_6, %c0_7] : memref<4x8x1xf32, #tpu.memory_space<vmem>>, vector<1x8x1xf32>
    %6 = vector.shape_cast %5 : vector<1x8x1xf32> to vector<8x1xf32>
    %c3 = arith.constant 3 : index
    %c0_8 = arith.constant 0 : index
    %c0_9 = arith.constant 0 : index
    %7 = vector.load %arg4[%c3, %c0_8, %c0_9] : memref<4x8x1xf32, #tpu.memory_space<vmem>>, vector<1x8x1xf32>
    %8 = vector.shape_cast %7 : vector<1x8x1xf32> to vector<8x1xf32>
    %c0_10 = arith.constant 0 : index
    %c0_11 = arith.constant 0 : index
    %c0_12 = arith.constant 0 : index
    %9 = vector.load %arg1[%c0_10, %c0_11, %c0_12] : memref<2x16x326xbf16, #tpu.memory_space<vmem>>, vector<1x16x326xbf16>
    %10 = vector.shape_cast %9 : vector<1x16x326xbf16> to vector<16x326xbf16>
    %11 = vector.extract_strided_slice %10 {offsets = [0, 0], sizes = [16, 288], strides = [1, 1]} : vector<16x326xbf16> to vector<16x288xbf16>
    %12 = vector.extract_strided_slice %10 {offsets = [0, 1], sizes = [16, 288], strides = [1, 1]} : vector<16x326xbf16> to vector<16x288xbf16>
    %13 = vector.extract_strided_slice %10 {offsets = [0, 2], sizes = [16, 288], strides = [1, 1]} : vector<16x326xbf16> to vector<16x288xbf16>
    %14 = vector.extract_strided_slice %10 {offsets = [0, 18], sizes = [16, 288], strides = [1, 1]} : vector<16x326xbf16> to vector<16x288xbf16>
    %15 = vector.extract_strided_slice %10 {offsets = [0, 19], sizes = [16, 288], strides = [1, 1]} : vector<16x326xbf16> to vector<16x288xbf16>
    %16 = vector.extract_strided_slice %10 {offsets = [0, 20], sizes = [16, 288], strides = [1, 1]} : vector<16x326xbf16> to vector<16x288xbf16>
    %17 = vector.extract_strided_slice %10 {offsets = [0, 36], sizes = [16, 288], strides = [1, 1]} : vector<16x326xbf16> to vector<16x288xbf16>
    %18 = vector.extract_strided_slice %10 {offsets = [0, 37], sizes = [16, 288], strides = [1, 1]} : vector<16x326xbf16> to vector<16x288xbf16>
    %19 = vector.extract_strided_slice %10 {offsets = [0, 38], sizes = [16, 288], strides = [1, 1]} : vector<16x326xbf16> to vector<16x288xbf16>
    %20 = tpu.concatenate %11, %12, %13, %14, %15, %16, %17, %18, %19 in 0 : vector<16x288xbf16>, vector<16x288xbf16>, vector<16x288xbf16>, vector<16x288xbf16>, vector<16x288xbf16>, vector<16x288xbf16>, vector<16x288xbf16>, vector<16x288xbf16>, vector<16x288xbf16> -> vector<144x288xbf16>
    %cst = arith.constant dense<0.000000e+00> : vector<32x288xf32>
    %21 = tpu.matmul %0, %20, %cst {dimension_numbers = #tpu.dot_dimension_numbers<[1], [0], [0], [1], [0, 0, 1, 1], [], []>} : vector<32x144xbf16>, vector<144x288xbf16>, vector<32x288xf32> -> vector<32x288xf32>
    %22 = vector.extract_strided_slice %21 {offsets = [0, 0], sizes = [8, 288], strides = [1, 1]} : vector<32x288xf32> to vector<8x288xf32>
    %23 = vector.broadcast %2 : vector<8x1xf32> to vector<8x288xf32>
    %24 = arith.addf %22, %23 : vector<8x288xf32>
    %25 = arith.negf %24 : vector<8x288xf32>
    %26 = math.exp %25 : vector<8x288xf32>
    %cst_13 = arith.constant 1.000000e+00 : f32
    %27 = vector.broadcast %cst_13 : f32 to vector<8x288xf32>
    %28 = arith.addf %27, %26 : vector<8x288xf32>
    %29 = arith.divf %27, %28 : vector<8x288xf32>
    %30 = vector.extract_strided_slice %21 {offsets = [8, 0], sizes = [8, 288], strides = [1, 1]} : vector<32x288xf32> to vector<8x288xf32>
    %31 = vector.broadcast %4 : vector<8x1xf32> to vector<8x288xf32>
    %32 = arith.addf %30, %31 : vector<8x288xf32>
    %33 = arith.negf %32 : vector<8x288xf32>
    %34 = math.exp %33 : vector<8x288xf32>
    %cst_14 = arith.constant 1.000000e+00 : f32
    %35 = vector.broadcast %cst_14 : f32 to vector<8x288xf32>
    %36 = arith.addf %35, %34 : vector<8x288xf32>
    %37 = arith.divf %35, %36 : vector<8x288xf32>
    %38 = vector.extract_strided_slice %21 {offsets = [16, 0], sizes = [8, 288], strides = [1, 1]} : vector<32x288xf32> to vector<8x288xf32>
    %39 = vector.broadcast %6 : vector<8x1xf32> to vector<8x288xf32>
    %40 = arith.addf %38, %39 : vector<8x288xf32>
    %41 = vector.extract_strided_slice %21 {offsets = [24, 0], sizes = [8, 288], strides = [1, 1]} : vector<32x288xf32> to vector<8x288xf32>
    %42 = vector.broadcast %8 : vector<8x1xf32> to vector<8x288xf32>
    %43 = arith.addf %41, %42 : vector<8x288xf32>
    %44 = arith.mulf %29, %43 : vector<8x288xf32>
    %45 = arith.addf %40, %44 : vector<8x288xf32>
    %46 = math.tanh %45 : vector<8x288xf32>
    %cst_15 = arith.constant 1.000000e+00 : f32
    %47 = vector.broadcast %cst_15 : f32 to vector<8x288xf32>
    %48 = arith.subf %47, %37 : vector<8x288xf32>
    %49 = arith.mulf %48, %46 : vector<8x288xf32>
    %c0_16 = arith.constant 0 : index
    %c0_17 = arith.constant 0 : index
    %c0_18 = arith.constant 0 : index
    %50 = vector.load %arg2[%c0_16, %c0_17, %c0_18] : memref<2x8x288xf32, #tpu.memory_space<vmem>>, vector<1x8x288xf32>
    %51 = vector.shape_cast %50 : vector<1x8x288xf32> to vector<8x288xf32>
    %52 = arith.mulf %37, %51 : vector<8x288xf32>
    %53 = arith.addf %49, %52 : vector<8x288xf32>
    %c0_19 = arith.constant 0 : index
    %c0_20 = arith.constant 0 : index
    %c0_21 = arith.constant 0 : index
    %54 = vector.load %arg5[%c0_19, %c0_20, %c0_21] : memref<2x8x288xf32, #tpu.memory_space<vmem>>, vector<1x8x288xf32>
    %55 = vector.shape_cast %54 : vector<1x8x288xf32> to vector<8x288xf32>
    %56 = vector.shape_cast %53 : vector<8x288xf32> to vector<1x8x288xf32>
    tpu.vector_store %arg5[%c0_19, %c0_20, %c0_21], %56 {strides = array<i32>} : memref<2x8x288xf32, #tpu.memory_space<vmem>>, vector<1x8x288xf32>,
    %c1_22 = arith.constant 1 : index
    %c0_23 = arith.constant 0 : index
    %c0_24 = arith.constant 0 : index
    %57 = vector.load %arg1[%c1_22, %c0_23, %c0_24] : memref<2x16x326xbf16, #tpu.memory_space<vmem>>, vector<1x16x326xbf16>
    %58 = vector.shape_cast %57 : vector<1x16x326xbf16> to vector<16x326xbf16>
    %59 = vector.extract_strided_slice %58 {offsets = [0, 0], sizes = [16, 288], strides = [1, 1]} : vector<16x326xbf16> to vector<16x288xbf16>
    %60 = vector.extract_strided_slice %58 {offsets = [0, 1], sizes = [16, 288], strides = [1, 1]} : vector<16x326xbf16> to vector<16x288xbf16>
    %61 = vector.extract_strided_slice %58 {offsets = [0, 2], sizes = [16, 288], strides = [1, 1]} : vector<16x326xbf16> to vector<16x288xbf16>
    %62 = vector.extract_strided_slice %58 {offsets = [0, 18], sizes = [16, 288], strides = [1, 1]} : vector<16x326xbf16> to vector<16x288xbf16>
    %63 = vector.extract_strided_slice %58 {offsets = [0, 19], sizes = [16, 288], strides = [1, 1]} : vector<16x326xbf16> to vector<16x288xbf16>
    %64 = vector.extract_strided_slice %58 {offsets = [0, 20], sizes = [16, 288], strides = [1, 1]} : vector<16x326xbf16> to vector<16x288xbf16>
    %65 = vector.extract_strided_slice %58 {offsets = [0, 36], sizes = [16, 288], strides = [1, 1]} : vector<16x326xbf16> to vector<16x288xbf16>
    %66 = vector.extract_strided_slice %58 {offsets = [0, 37], sizes = [16, 288], strides = [1, 1]} : vector<16x326xbf16> to vector<16x288xbf16>
    %67 = vector.extract_strided_slice %58 {offsets = [0, 38], sizes = [16, 288], strides = [1, 1]} : vector<16x326xbf16> to vector<16x288xbf16>
    %68 = tpu.concatenate %59, %60, %61, %62, %63, %64, %65, %66, %67 in 0 : vector<16x288xbf16>, vector<16x288xbf16>, vector<16x288xbf16>, vector<16x288xbf16>, vector<16x288xbf16>, vector<16x288xbf16>, vector<16x288xbf16>, vector<16x288xbf16>, vector<16x288xbf16> -> vector<144x288xbf16>
    %cst_25 = arith.constant dense<0.000000e+00> : vector<32x288xf32>
    %69 = tpu.matmul %0, %68, %cst_25 {dimension_numbers = #tpu.dot_dimension_numbers<[1], [0], [0], [1], [0, 0, 1, 1], [], []>} : vector<32x144xbf16>, vector<144x288xbf16>, vector<32x288xf32> -> vector<32x288xf32>
    %70 = vector.extract_strided_slice %69 {offsets = [0, 0], sizes = [8, 288], strides = [1, 1]} : vector<32x288xf32> to vector<8x288xf32>
    %71 = vector.broadcast %2 : vector<8x1xf32> to vector<8x288xf32>
    %72 = arith.addf %70, %71 : vector<8x288xf32>
    %73 = arith.negf %72 : vector<8x288xf32>
    %74 = math.exp %73 : vector<8x288xf32>
    %cst_26 = arith.constant 1.000000e+00 : f32
    %75 = vector.broadcast %cst_26 : f32 to vector<8x288xf32>
    %76 = arith.addf %75, %74 : vector<8x288xf32>
    %77 = arith.divf %75, %76 : vector<8x288xf32>
    %78 = vector.extract_strided_slice %69 {offsets = [8, 0], sizes = [8, 288], strides = [1, 1]} : vector<32x288xf32> to vector<8x288xf32>
    %79 = vector.broadcast %4 : vector<8x1xf32> to vector<8x288xf32>
    %80 = arith.addf %78, %79 : vector<8x288xf32>
    %81 = arith.negf %80 : vector<8x288xf32>
    %82 = math.exp %81 : vector<8x288xf32>
    %cst_27 = arith.constant 1.000000e+00 : f32
    %83 = vector.broadcast %cst_27 : f32 to vector<8x288xf32>
    %84 = arith.addf %83, %82 : vector<8x288xf32>
    %85 = arith.divf %83, %84 : vector<8x288xf32>
    %86 = vector.extract_strided_slice %69 {offsets = [16, 0], sizes = [8, 288], strides = [1, 1]} : vector<32x288xf32> to vector<8x288xf32>
    %87 = vector.broadcast %6 : vector<8x1xf32> to vector<8x288xf32>
    %88 = arith.addf %86, %87 : vector<8x288xf32>
    %89 = vector.extract_strided_slice %69 {offsets = [24, 0], sizes = [8, 288], strides = [1, 1]} : vector<32x288xf32> to vector<8x288xf32>
    %90 = vector.broadcast %8 : vector<8x1xf32> to vector<8x288xf32>
    %91 = arith.addf %89, %90 : vector<8x288xf32>
    %92 = arith.mulf %77, %91 : vector<8x288xf32>
    %93 = arith.addf %88, %92 : vector<8x288xf32>
    %94 = math.tanh %93 : vector<8x288xf32>
    %cst_28 = arith.constant 1.000000e+00 : f32
    %95 = vector.broadcast %cst_28 : f32 to vector<8x288xf32>
    %96 = arith.subf %95, %85 : vector<8x288xf32>
    %97 = arith.mulf %96, %94 : vector<8x288xf32>
    %c1_29 = arith.constant 1 : index
    %c0_30 = arith.constant 0 : index
    %c0_31 = arith.constant 0 : index
    %98 = vector.load %arg2[%c1_29, %c0_30, %c0_31] : memref<2x8x288xf32, #tpu.memory_space<vmem>>, vector<1x8x288xf32>
    %99 = vector.shape_cast %98 : vector<1x8x288xf32> to vector<8x288xf32>
    %100 = arith.mulf %85, %99 : vector<8x288xf32>
    %101 = arith.addf %97, %100 : vector<8x288xf32>
    %c1_32 = arith.constant 1 : index
    %c0_33 = arith.constant 0 : index
    %c0_34 = arith.constant 0 : index
    %102 = vector.load %arg5[%c1_32, %c0_33, %c0_34] : memref<2x8x288xf32, #tpu.memory_space<vmem>>, vector<1x8x288xf32>
    %103 = vector.shape_cast %102 : vector<1x8x288xf32> to vector<8x288xf32>
    %104 = vector.shape_cast %101 : vector<8x288xf32> to vector<1x8x288xf32>
    tpu.vector_store %arg5[%c1_32, %c0_33, %c0_34], %104 {strides = array<i32>} : memref<2x8x288xf32, #tpu.memory_space<vmem>>, vector<1x8x288xf32>,
    return
  }
  func.func @transform_0(%arg0: i32) -> (i32, i32, i32) {
    %c0_i32 = arith.constant 0 : i32
    %c0_i32_0 = arith.constant 0 : i32
    %c0_i32_1 = arith.constant 0 : i32
    return %arg0, %c0_i32, %c0_i32_0 : i32, i32, i32
  }
  func.func @transform_1(%arg0: i32) -> (i32, i32, i32) {
    %c0_i32 = arith.constant 0 : i32
    %c0_i32_0 = arith.constant 0 : i32
    %c0_i32_1 = arith.constant 0 : i32
    return %arg0, %c0_i32, %c0_i32_0 : i32, i32, i32
  }
  func.func @transform_2(%arg0: i32) -> (i32, i32) {
    %c0_i32 = arith.constant 0 : i32
    %c0_i32_0 = arith.constant 0 : i32
    %c0_i32_1 = arith.constant 0 : i32
    return %c0_i32, %c0_i32_0 : i32, i32
  }
  func.func @transform_3(%arg0: i32) -> (i32, i32, i32) {
    %c0_i32 = arith.constant 0 : i32
    %c0_i32_0 = arith.constant 0 : i32
    %c0_i32_1 = arith.constant 0 : i32
    %c0_i32_2 = arith.constant 0 : i32
    return %c0_i32, %c0_i32_0, %c0_i32_1 : i32, i32, i32
  }
  func.func @transform_4(%arg0: i32) -> (i32, i32, i32) {
    %c0_i32 = arith.constant 0 : i32
    %c0_i32_0 = arith.constant 0 : i32
    %c0_i32_1 = arith.constant 0 : i32
    return %arg0, %c0_i32, %c0_i32_0 : i32, i32, i32
  }
}

</mosaic_0001>

<bundles_post_ra>
// kernel: tpu_custom_call.1
= control target key start
LH: loop header
LB: loop body
LE: loop exit
PB: predicated region body
PF: predicated region fallthrough
CT: control target
= control target key end

     0   :  { %9 = vsyncpa [#allocation3], 0  ;;  %s1200_s0 = inlined_call_operand.hbm [shape: bf16[2,16,326], index: 0, kind: input, shape index: {}]   ;;  %s1201_s1 = inlined_call_operand.hbm [shape: f32[2,8,288], index: 1, kind: input, shape index: {}]   ;;  %s1202_s2 = inlined_call_operand.vmem [shape: bf16[32,144], index: 2, kind: input, shape index: {}]   ;;  %s1203_s3 = inlined_call_operand.vmem [shape: f32[4,8,1], index: 3, kind: input, shape index: {}]   ;;  %s1204_s4 = inlined_call_operand.hbm [shape: f32[2,8,288], index: 4, kind: output, shape index: {}]  }
   0x1   :  { %10 = vsyncpa [#allocation6], 0 }
   0x2   :  { %11 = vsyncpa [#allocation4], 0  ;;  %s900_s15 = smov [#allocation2]   ;;  %s828_s19 = scalar_lea.hbm %s1200_s0, 768 }
   0x3   :  { %s17_s16 = sshll.u32 %s900_s15, 4  ;;  %p829_p0 = scmp.ne.s32.totalorder %s1200_s0, %s828_s19  ;;  %s18_s16 = int_to_ptr.vmem [resolvable:$true] %s17_s16 }
   0x4   :  { %p832_p1 = scmp.lt.u32.totalorder %s828_s19, %s1200_s0 }
   0x6   :  { %p834_p2 = pnand %p832_p1, %p829_p0 }
   0x8   :  { %837 = shalt.err (!%p834_p2)
}
   0x9   :  { %s838_s24 = scalar_lea.vmem %s18_s16, 768  ;;  %p843_p4 = scmp.lt.s32.totalorder %s18_s16, %s18_s16 }
   0xa   :  { %p839_p3 = scmp.ne.s32.totalorder %s18_s16, %s838_s24  ;;  %p844_p5 = scmp.lt.s32.totalorder %s838_s24, %s838_s24 }
   0xc   :  { %p845_p6 = por %p844_p5, %p843_p4 }
   0xe   :  { %p846_p7 = pnand %p845_p6, %p839_p3 }
  0x10   :  { %849 = shalt.err (!%p846_p7)
}
  0x11   :  { %s901_s25 = smov 192   ;;  %s902_s26 = smov 12  }
  0x12   :  { %23 = dma.hbm_to_vmem [thread:$0]  %s1200_s0, 768, %s18_s16, [#allocation3], %s901_s25, %s901_s25, %s902_s26  }
  0x13   :  { %s903_s29 = smov [#allocation5]   ;;  %s850_s7 = scalar_lea.hbm %s1201_s1, 768 }
  0x14   :  { %s29_s30 = sshll.u32 %s903_s29, 4  ;;  %p851_p8 = scmp.ne.s32.totalorder %s1201_s1, %s850_s7  ;;  %s30_s30 = int_to_ptr.vmem [resolvable:$true] %s29_s30 }
  0x15   :  { %p854_p9 = scmp.lt.u32.totalorder %s850_s7, %s1201_s1 }
  0x17   :  { %p856_p10 = pnand %p854_p9, %p851_p8 }
  0x19   :  { %859 = shalt.err (!%p856_p10)
}
  0x1a   :  { %s860_s12 = scalar_lea.vmem %s30_s30, 768  ;;  %p865_p12 = scmp.lt.s32.totalorder %s30_s30, %s30_s30 }
  0x1b   :  { %p861_p11 = scmp.ne.s32.totalorder %s30_s30, %s860_s12  ;;  %p866_p13 = scmp.lt.s32.totalorder %s860_s12, %s860_s12 }
  0x1d   :  { %p867_p0 = por %p866_p13, %p865_p12 }
  0x1f   :  { %p868_p1 = pnand %p867_p0, %p861_p11 }
  0x21   :  { %871 = shalt.err (!%p868_p1)
}
  0x22   :  { %s904_s0 = smov 384   ;;  %s905_s13 = smov 24  }
  0x23   :  { %35 = dma.hbm_to_vmem [thread:$0]  %s1201_s1, 768, %s30_s30, [#allocation6], %s904_s0, %s904_s0, %s905_s13  }
  0x24   :  { %894 = dma.done.wait [#allocation3], 768  }
  0x25   :  { %895 = vsyncadd [#allocation3], 4294966528 }
  0x26   :  { %896 = dma.done.wait [#allocation6], 768  }
  0x27   :  { %897 = vsyncadd [#allocation6], 4294966528  ;;  %v906_v0 = vmov 0   ;;  %v754_v1 = vld [vmem:[#allocation2 + $0x4] ss:$12 sps:$4 sm:$0xff]   ;;  %s907_s16 = smov 127  }
  0x28   :  { %252 = vmatprep.subr.bf16.mxu1 %v906_v0  ;;  %752 = vset.pattern.permute.xlu0 %v906_v0  ;;  %v756_v2 = vld [vmem:[#allocation2] ss:$12 sps:$4 sm:$0xff]   ;;  %v757_v3 = vld [vmem:[#allocation2 + $0x8] ss:$12 sps:$4 sm:$0xff]   ;;  %s908_s1 = smov 126   ;;  %s909_s17 = smov 110  }
  0x29   :  { %753 = vset.pattern.permute.xlu1 %v906_v0  ;;  %80 = vrot.lane.b32.xlu0 %v754_v1, %s907_s16  ;;  %s910_s18 = smov 109   ;;  %s911_s19 = smov 108   ;;  %v993_v4 = vld [vmem:[%s1202_s2 + $0x4] ss:$8 sps:$4 sm:$0xff]   ;;  %vm192_vm0 = vcmask 130048   ;;  %v704_v10 = vld [vmem:[%s1203_s3 + $0x10] sm:$0xff] }
  0x2a   :  { %199 = vmatprep.subr.bf16.mxu0 %v754_v1  ;;  %78 = vrot.lane.b32.xlu1 %v756_v2, %s907_s16  ;;  %s912_s20 = smov 92   ;;  %s913_s23 = smov 91   ;;  %v1002_v5 = vld [vmem:[#allocation2 + $0x1c] ss:$12 sps:$4 sm:$0xff]   ;;  %v1004_v6 = vld [vmem:[#allocation2 + $0x20] ss:$12 sps:$4 sm:$0xff]  }
  0x2b   :  { %200 = vmatpush1.bf16.msra.mxu0 %v756_v2  ;;  %253 = vmatpush1.bf16.msra.mxu1 %v757_v3  ;;  %s914_s24 = smov 90   ;;  %v1008_v7 = vld [vmem:[#allocation2 + $0x18] ss:$12 sps:$4 sm:$0xff]   ;;  %v703_v9 = vld [vmem:[%s1203_s3 + $0x8] sm:$0xff]  ;;  %vm84_vm1 = vcmask 1039360   ;;  %vm96_vm2 = vcmask 1031168  }
  0x2c   :  { %254 = vmatprep.subr.bf16.mxu1 %v906_v0  ;;  %715 = vmatprep.mubr.msk.bf16.mxu1 %vm192_vm0, %v993_v4  ;;  %v51_v8 = vld [vmem:[%s1203_s3] sm:$0xff]  ;;  %v705_v11 = vld [vmem:[%s1203_s3 + $0x18] sm:$0xff]  ;;  %vm108_vm3 = vcmask 900096   ;;  %vm120_vm4 = vcmask 891904   ;;  %vm132_vm5 = vcmask 883712   ;;  %vm144_vm6 = vcmask 752640  }
  0x2d   :  { %82 = vrot.lane.b32.xlu0 %v757_v3, %s907_s16  ;;  %713 = vmatprep.mubr.msk.bf16.mxu0 %vm192_vm0, %v993_v4  ;;  %vm156_vm7 = vcmask 744448   ;;  %vm168_vm8 = vcmask 736256   ;;  %v1089_v49 = vld [vmem:[%s1202_s2] ss:$8 sps:$4 sm:$0xff]   ;;  %v1095_v52 = vld [vmem:[%s1202_s2 + $0x14] ss:$8 sps:$4 sm:$0xff]  }
  0x2e   :  { %92 = vrot.lane.b32.xlu1 %v754_v1, %s908_s1  ;;  %v1113_v58 = vld [vmem:[%s1202_s2 + $0x10] ss:$8 sps:$4 sm:$0xff]   ;;  %vm395_vm9 = vcmask 261120   ;;  %s915_s2 = smov [#allocation7]  }
  0x2f   :  { %s690_s12 = sshll.u32 %s915_s2, 4  ;;  %s691_s12 = int_to_ptr.vmem [resolvable:$true] %s690_s12 }
  0x30   :  { %s872_s14 = scalar_lea.vmem %s691_s12, 768  ;;  %p877_p3 = scmp.lt.s32.totalorder %s691_s12, %s691_s12 }
  0x31   :  { %94 = vrot.lane.b32.xlu0 %v757_v3, %s908_s1  ;;  %p873_p2 = scmp.ne.s32.totalorder %s691_s12, %s872_s14  ;;  %p878_p4 = scmp.lt.s32.totalorder %s872_s14, %s872_s14 }
  0x32   :  { %90 = vrot.lane.b32.xlu1 %v756_v2, %s908_s1 }
  0x33   :  { %p879_p5 = por %p878_p4, %p877_p3 }
  0x35   :  { %104 = vrot.lane.b32.xlu0 %v754_v1, %s909_s17  ;;  %p880_p6 = pnand %p879_p5, %p873_p2 }
  0x36   :  { %106 = vrot.lane.b32.xlu1 %v757_v3, %s909_s17 }
  0x39   :  { %102 = vrot.lane.b32.xlu0 %v756_v2, %s909_s17 }
  0x3a   :  { %116 = vrot.lane.b32.xlu1 %v754_v1, %s910_s18 }
  0x3d   :  { %118 = vrot.lane.b32.xlu0 %v757_v3, %s910_s18 }
  0x3e   :  { %114 = vrot.lane.b32.xlu1 %v756_v2, %s910_s18 }
  0x41   :  { %128 = vrot.lane.b32.xlu0 %v754_v1, %s911_s19 }
  0x42   :  { %130 = vrot.lane.b32.xlu1 %v757_v3, %s911_s19 }
  0x45   :  { %126 = vrot.lane.b32.xlu0 %v756_v2, %s911_s19 }
  0x46   :  { %140 = vrot.lane.b32.xlu1 %v754_v1, %s912_s20 }
  0x49   :  { %142 = vrot.lane.b32.xlu0 %v757_v3, %s912_s20 }
  0x4a   :  { %138 = vrot.lane.b32.xlu1 %v756_v2, %s912_s20 }
  0x4d   :  { %152 = vrot.lane.b32.xlu0 %v754_v1, %s913_s23 }
  0x4e   :  { %154 = vrot.lane.b32.xlu1 %v757_v3, %s913_s23 }
  0x51   :  { %150 = vrot.lane.b32.xlu0 %v756_v2, %s913_s23 }
  0x52   :  { %164 = vrot.lane.b32.xlu1 %v754_v1, %s914_s24 }
  0x55   :  { %166 = vrot.lane.b32.xlu0 %v757_v3, %s914_s24 }
  0x56   :  { %162 = vrot.lane.b32.xlu1 %v756_v2, %s914_s24 }
  0x59   :  { %420 = vrot.lane.b32.xlu0 %v1002_v5, %s907_s16 }
  0x5a   :  { %422 = vrot.lane.b32.xlu1 %v1004_v6, %s907_s16 }
  0x5d   :  { %418 = vrot.lane.b32.xlu0 %v1008_v7, %s907_s16 }
  0x5e   :  { %431 = vrot.lane.b32.xlu1 %v1002_v5, %s908_s1 }
  0x61   :  { %433 = vrot.lane.b32.xlu0 %v1004_v6, %s908_s1 }
  0x62   :  { %429 = vrot.lane.b32.xlu1 %v1008_v7, %s908_s1 }
  0x65   :  { %442 = vrot.lane.b32.xlu0 %v1002_v5, %s909_s17 }
  0x66   :  { %444 = vrot.lane.b32.xlu1 %v1004_v6, %s909_s17 }
  0x69   :  { %440 = vrot.lane.b32.xlu0 %v1008_v7, %s909_s17 }
  0x6a   :  { %453 = vrot.lane.b32.xlu1 %v1002_v5, %s910_s18 }
  0x6d   :  { %455 = vrot.lane.b32.xlu0 %v1004_v6, %s910_s18 }
  0x6e   :  { %451 = vrot.lane.b32.xlu1 %v1008_v7, %s910_s18 }
  0x71   :  { %464 = vrot.lane.b32.xlu0 %v1002_v5, %s911_s19 }
  0x72   :  { %466 = vrot.lane.b32.xlu1 %v1004_v6, %s911_s19 }
  0x75   :  { %462 = vrot.lane.b32.xlu0 %v1008_v7, %s911_s19 }
  0x76   :  { %475 = vrot.lane.b32.xlu1 %v1002_v5, %s912_s20 }
  0x79   :  { %477 = vrot.lane.b32.xlu0 %v1004_v6, %s912_s20 }
  0x7a   :  { %473 = vrot.lane.b32.xlu1 %v1008_v7, %s912_s20 }
  0x7d   :  { %486 = vrot.lane.b32.xlu0 %v1002_v5, %s913_s23 }
  0x7e   :  { %488 = vrot.lane.b32.xlu1 %v1004_v6, %s913_s23 }
  0x81   :  { %484 = vrot.lane.b32.xlu0 %v1008_v7, %s913_s23 }
  0x82   :  { %497 = vrot.lane.b32.xlu1 %v1002_v5, %s914_s24 }
  0x85   :  { %499 = vrot.lane.b32.xlu0 %v1004_v6, %s914_s24 }
  0x86   :  { %495 = vrot.lane.b32.xlu1 %v1008_v7, %s914_s24 }
  0x89   :  { %303 = vperm.xlu0 %752, %v51_v8  }
  0x8a   :  { %329 = vperm.xlu1 %753, %v703_v9  }
  0x8d   :  { %355 = vperm.xlu0 %752, %v704_v10  }
  0x8e   :  { %363 = vperm.xlu1 %753, %v705_v11  }
  0x9b   :  { %v81_v12 = vpop.permute.xlu0 %80 }
  0x9c   :  { %v79_v13 = vpop.permute.xlu1 %78 }
  0x9d   :  { %v85_v17 = vsel %vm84_vm1, %v79_v13, %v81_v12 }
  0x9f   :  { %v83_v14 = vpop.permute.xlu0 %82 }
  0xa0   :  { %v93_v15 = vpop.permute.xlu1 %92  ;;  %255 = vmatpush1.bf16.msra.mxu1 %v83_v14  ;;  %v86_v16 = vsel %vm84_vm1, %v81_v12, %v83_v14 }
  0xa1   :  { %201 = vmatprep.subr.bf16.mxu0 %v86_v16  ;;  %256 = vmatprep.subr.bf16.mxu1 %v906_v0 }
  0xa2   :  { %202 = vmatpush1.bf16.msra.mxu0 %v85_v17 }
  0xa3   :  { %v95_v18 = vpop.permute.xlu0 %94 }
  0xa4   :  { %v91_v19 = vpop.permute.xlu1 %90  ;;  %257 = vmatpush1.bf16.msra.mxu1 %v95_v18  ;;  %v98_v20 = vsel %vm96_vm2, %v93_v15, %v95_v18 }
  0xa5   :  { %203 = vmatprep.subr.bf16.mxu0 %v98_v20  ;;  %v97_v21 = vsel %vm96_vm2, %v91_v19, %v93_v15  ;;  %258 = vmatprep.subr.bf16.mxu1 %v906_v0 }
  0xa6   :  { %204 = vmatpush1.bf16.msra.mxu0 %v97_v21 }
  0xa7   :  { %v105_v22 = vpop.permute.xlu0 %104 }
  0xa8   :  { %v107_v23 = vpop.permute.xlu1 %106 }
  0xa9   :  { %v110_v24 = vsel %vm108_vm3, %v105_v22, %v107_v23  ;;  %259 = vmatpush1.bf16.msra.mxu1 %v107_v23 }
  0xaa   :  { %205 = vmatprep.subr.bf16.mxu0 %v110_v24  ;;  %260 = vmatprep.subr.bf16.mxu1 %v906_v0 }
  0xab   :  { %v103_v25 = vpop.permute.xlu0 %102 }
  0xac   :  { %v117_v26 = vpop.permute.xlu1 %116  ;;  %v109_v27 = vsel %vm108_vm3, %v103_v25, %v105_v22 }
  0xad   :  { %206 = vmatpush1.bf16.msra.mxu0 %v109_v27 }
  0xaf   :  { %v119_v28 = vpop.permute.xlu0 %118 }
  0xb0   :  { %v115_v29 = vpop.permute.xlu1 %114  ;;  %261 = vmatpush1.bf16.msra.mxu1 %v119_v28  ;;  %v122_v30 = vsel %vm120_vm4, %v117_v26, %v119_v28 }
  0xb1   :  { %207 = vmatprep.subr.bf16.mxu0 %v122_v30  ;;  %v121_v31 = vsel %vm120_vm4, %v115_v29, %v117_v26  ;;  %262 = vmatprep.subr.bf16.mxu1 %v906_v0 }
  0xb2   :  { %208 = vmatpush1.bf16.msra.mxu0 %v121_v31 }
  0xb3   :  { %v129_v32 = vpop.permute.xlu0 %128 }
  0xb4   :  { %v131_v33 = vpop.permute.xlu1 %130 }
  0xb5   :  { %v134_v34 = vsel %vm132_vm5, %v129_v32, %v131_v33  ;;  %263 = vmatpush1.bf16.msra.mxu1 %v131_v33 }
  0xb6   :  { %209 = vmatprep.subr.bf16.mxu0 %v134_v34  ;;  %264 = vmatprep.subr.bf16.mxu1 %v906_v0 }
  0xb7   :  { %v127_v35 = vpop.permute.xlu0 %126 }
  0xb8   :  { %v141_v36 = vpop.permute.xlu1 %140  ;;  %v133_v37 = vsel %vm132_vm5, %v127_v35, %v129_v32 }
  0xb9   :  { %210 = vmatpush1.bf16.msra.mxu0 %v133_v37 }
  0xbb   :  { %v143_v38 = vpop.permute.xlu0 %142 }
  0xbc   :  { %v139_v39 = vpop.permute.xlu1 %138  ;;  %265 = vmatpush1.bf16.msra.mxu1 %v143_v38  ;;  %v146_v40 = vsel %vm144_vm6, %v141_v36, %v143_v38 }
  0xbd   :  { %211 = vmatprep.subr.bf16.mxu0 %v146_v40  ;;  %v145_v41 = vsel %vm144_vm6, %v139_v39, %v141_v36  ;;  %266 = vmatprep.subr.bf16.mxu1 %v906_v0 }
  0xbe   :  { %212 = vmatpush1.bf16.msra.mxu0 %v145_v41 }
  0xbf   :  { %v153_v42 = vpop.permute.xlu0 %152 }
  0xc0   :  { %v155_v43 = vpop.permute.xlu1 %154 }
  0xc1   :  { %v158_v44 = vsel %vm156_vm7, %v153_v42, %v155_v43  ;;  %267 = vmatpush1.bf16.msra.mxu1 %v155_v43 }
  0xc2   :  { %213 = vmatprep.subr.bf16.mxu0 %v158_v44  ;;  %268 = vmatprep.subr.bf16.mxu1 %v906_v0 }
  0xc3   :  { %v151_v45 = vpop.permute.xlu0 %150 }
  0xc4   :  { %v165_v46 = vpop.permute.xlu1 %164  ;;  %v157_v47 = vsel %vm156_vm7, %v151_v45, %v153_v42 }
  0xc5   :  { %214 = vmatpush1.bf16.msra.mxu0 %v157_v47 }
  0xc7   :  { %v167_v48 = vpop.permute.xlu0 %166 }
  0xc8   :  { %v163_v50 = vpop.permute.xlu1 %162  ;;  %269 = vmatpush1.bf16.msra.mxu1 %v167_v48  ;;  %v170_v51 = vsel %vm168_vm8, %v165_v46, %v167_v48 }
  0xc9   :  { %215 = vmatprep.subr.bf16.mxu0 %v170_v51  ;;  %v169_v53 = vsel %vm168_vm8, %v163_v50, %v165_v46  ;;  %559 = vmatprep.subr.bf16.mxu1 %v906_v0 }
  0xca   :  { %216 = vmatpush1.bf16.msra.mxu0 %v169_v53 }
  0xcb   :  { %v421_v54 = vpop.permute.xlu0 %420  ;;  %285 = vmatmul.mubr.bf16.vlgmr.msra.gmra.mrb[0].mxu1 %v1089_v49  ;;  %506 = vmatprep.subr.bf16.mxu0 %v1002_v5 }
  0xcc   :  { %v423_v55 = vpop.permute.xlu1 %422  ;;  %560 = vmatpush1.bf16.msra.mxu1 %v1004_v6  ;;  %716 = vmatprep.mubr.msk.bf16.mxu1 %vm192_vm0, %v1095_v52 }
  0xcd   :  { %232 = vmatmul.mubr.bf16.vlgmr.msra.gmra.mrb[0].mxu0 %v1089_v49  ;;  %561 = vmatprep.subr.bf16.mxu1 %v906_v0  ;;  %v425_v56 = vsel %vm84_vm1, %v421_v54, %v423_v55 }
  0xce   :  { %507 = vmatpush1.bf16.msra.mxu0 %v1008_v7  ;;  %714 = vmatprep.mubr.msk.bf16.mxu0 %vm192_vm0, %v1095_v52 }
  0xcf   :  { %v419_v57 = vpop.permute.xlu0 %418  ;;  %508 = vmatprep.subr.bf16.mxu0 %v425_v56 }
  0xd0   :  { %v424_v59 = vsel %vm84_vm1, %v419_v57, %v421_v54  ;;  %v432_v60 = vpop.permute.xlu1 %431  ;;  %562 = vmatpush1.bf16.msra.mxu1 %v423_v55 }
  0xd1   :  { %563 = vmatprep.subr.bf16.mxu1 %v906_v0 }
  0xd2   :  { %509 = vmatpush1.bf16.msra.mxu0 %v424_v59 }
  0xd3   :  { %v434_v61 = vpop.permute.xlu0 %433  ;;  %293 = vmatmul.mubr.bf16.gmra.mrb[4].mxu1 %v1113_v58 }
  0xd4   :  { %v430_v62 = vpop.permute.xlu1 %429  ;;  %564 = vmatpush1.bf16.msra.mxu1 %v434_v61  ;;  %v436_v63 = vsel %vm96_vm2, %v432_v60, %v434_v61  ;;  %728 = vmatprep.mubr.msk.bf16.mxu1 %vm192_vm0, %v993_v4 }
  0xd5   :  { %v435_v1 = vsel %vm96_vm2, %v430_v62, %v432_v60  ;;  %510 = vmatprep.subr.bf16.mxu0 %v436_v63  ;;  %565 = vmatprep.subr.bf16.mxu1 %v906_v0 }
  0xd6   :  { %511 = vmatpush1.bf16.msra.mxu0 %v435_v1 }
  0xd7   :  { %v443_v2 = vpop.permute.xlu0 %442  ;;  %242 = vmatmul.mubr.bf16.gmra.mrb[4].mxu0 %v1113_v58 }
  0xd8   :  { %v445_v3 = vpop.permute.xlu1 %444  ;;  %726 = vmatprep.mubr.msk.bf16.mxu0 %vm192_vm0, %v993_v4 }
  0xd9   :  { %v447_v5 = vsel %vm108_vm3, %v443_v2, %v445_v3  ;;  %566 = vmatpush1.bf16.msra.mxu1 %v445_v3 }
  0xda   :  { %512 = vmatprep.subr.bf16.mxu0 %v447_v5  ;;  %567 = vmatprep.subr.bf16.mxu1 %v906_v0 }
  0xdb   :  { %v441_v6 = vpop.permute.xlu0 %440 }
  0xdc   :  { %v446_v7 = vsel %vm108_vm3, %v441_v6, %v443_v2  ;;  %v454_v8 = vpop.permute.xlu1 %453 }
  0xdd   :  { %513 = vmatpush1.bf16.msra.mxu0 %v446_v7 }
  0xdf   :  { %v456_v9 = vpop.permute.xlu0 %455 }
  0xe0   :  { %v452_v10 = vpop.permute.xlu1 %451  ;;  %568 = vmatpush1.bf16.msra.mxu1 %v456_v9  ;;  %v458_v11 = vsel %vm120_vm4, %v454_v8, %v456_v9 }
  0xe1   :  { %v457_v12 = vsel %vm120_vm4, %v452_v10, %v454_v8  ;;  %514 = vmatprep.subr.bf16.mxu0 %v458_v11  ;;  %569 = vmatprep.subr.bf16.mxu1 %v906_v0 }
  0xe2   :  { %515 = vmatpush1.bf16.msra.mxu0 %v457_v12 }
  0xe3   :  { %v465_v4 = vpop.permute.xlu0 %464 }
  0xe4   :  { %v467_v13 = vpop.permute.xlu1 %466 }
  0xe5   :  { %v469_v14 = vsel %vm132_vm5, %v465_v4, %v467_v13  ;;  %570 = vmatpush1.bf16.msra.mxu1 %v467_v13 }
  0xe6   :  { %516 = vmatprep.subr.bf16.mxu0 %v469_v14  ;;  %571 = vmatprep.subr.bf16.mxu1 %v906_v0 }
  0xe7   :  { %v463_v15 = vpop.permute.xlu0 %462 }
  0xe8   :  { %v468_v16 = vsel %vm132_vm5, %v463_v15, %v465_v4  ;;  %v476_v17 = vpop.permute.xlu1 %475 }
  0xe9   :  { %517 = vmatpush1.bf16.msra.mxu0 %v468_v16 }
  0xeb   :  { %v478_v18 = vpop.permute.xlu0 %477 }
  0xec   :  { %v474_v19 = vpop.permute.xlu1 %473  ;;  %572 = vmatpush1.bf16.msra.mxu1 %v478_v18  ;;  %v480_v20 = vsel %vm144_vm6, %v476_v17, %v478_v18 }
  0xed   :  { %v479_v21 = vsel %vm144_vm6, %v474_v19, %v476_v17  ;;  %518 = vmatprep.subr.bf16.mxu0 %v480_v20  ;;  %573 = vmatprep.subr.bf16.mxu1 %v906_v0 }
  0xee   :  { %519 = vmatpush1.bf16.msra.mxu0 %v479_v21 }
  0xef   :  { %v487_v22 = vpop.permute.xlu0 %486 }
  0xf0   :  { %v489_v23 = vpop.permute.xlu1 %488 }
  0xf1   :  { %v491_v24 = vsel %vm156_vm7, %v487_v22, %v489_v23  ;;  %574 = vmatpush1.bf16.msra.mxu1 %v489_v23 }
  0xf2   :  { %520 = vmatprep.subr.bf16.mxu0 %v491_v24  ;;  %575 = vmatprep.subr.bf16.mxu1 %v906_v0 }
  0xf3   :  { %v485_v25 = vpop.permute.xlu0 %484 }
  0xf4   :  { %v490_v26 = vsel %vm156_vm7, %v485_v25, %v487_v22  ;;  %v498_v27 = vpop.permute.xlu1 %497 }
  0xf5   :  { %521 = vmatpush1.bf16.msra.mxu0 %v490_v26 }
  0xf7   :  { %v500_v28 = vpop.permute.xlu0 %499 }
  0xf8   :  { %v496_v29 = vpop.permute.xlu1 %495  ;;  %576 = vmatpush1.bf16.msra.mxu1 %v500_v28  ;;  %v502_v30 = vsel %vm168_vm8, %v498_v27, %v500_v28 }
  0xf9   :  { %v501_v31 = vsel %vm168_vm8, %v496_v29, %v498_v27  ;;  %522 = vmatprep.subr.bf16.mxu0 %v502_v30  ;;  %v386_v29 = vld [vmem:[#allocation5 + $0x10] sm:$0xff] }
  0xfa   :  { %523 = vmatpush1.bf16.msra.mxu0 %v501_v31 }
  0xfb   :  { %592 = vmatmul.mubr.bf16.vlgmr.msra.gmra.mrb[8].mxu1 %v1089_v49 }
  0xfc   :  { %729 = vmatprep.mubr.msk.bf16.mxu1 %vm192_vm0, %v1095_v52 }
  0xfd   :  { %539 = vmatmul.mubr.bf16.vlgmr.msra.gmra.mrb[8].mxu0 %v1089_v49 }
  0xfe   :  { %727 = vmatprep.mubr.msk.bf16.mxu0 %vm192_vm0, %v1095_v52 }
 0x103   :  { %600 = vmatmul.mubr.bf16.gmra.mrb[12].mxu1 %v1113_v58 }
 0x105   :  { %549 = vmatmul.mubr.bf16.gmra.mrb[12].mxu0 %v1113_v58 }
 0x108   :  { %v1151_v0 = vpop.permute.xlu0 %303 }
 0x109   :  { %v1153_v33 = vpop.permute.xlu1 %329 }
 0x10c   :  { %v1163_v10 = vpop.permute.xlu0 %355 }
 0x10d   :  { %v1161_v7 = vpop.permute.xlu1 %363 }
 0x19e   :  { %v286_v32 = vpop.f32.mrb[0].mxu1 }
 0x19f   :  { %v308_v34 = vadd.f32 %v1151_v0, %v286_v32  ;;  %v288_v35 = vpop.f32.mrb[1].mxu1 }
 0x1a0   :  { %v233_v36 = vpop.f32.mrb[0].mxu0  ;;  %v289_v37 = vpop.f32.mrb[2].mxu1 }
 0x1a1   :  { %v719_v38 = vmul.f32 -1.442695, %v308_v34  ;;  %v306_v39 = vadd.f32 %v1151_v0, %v233_v36  ;;  %v235_v40 = vpop.f32.mrb[1].mxu0  ;;  %v334_v41 = vadd.f32 %v1153_v33, %v289_v37  ;;  %v291_v42 = vpop.f32.mrb[3].mxu1  ;;  %v384_v36 = vld [vmem:[#allocation5] sm:$0xff] }
 0x1a2   :  { %v307_v43 = vadd.f32 %v1151_v0, %v235_v40  ;;  %v237_v44 = vpop.f32.mrb[2].mxu0 }
 0x1a3   :  { %768 = vpow2.f32 %v719_v38  ;;  %v717_v45 = vmul.f32 -1.442695, %v306_v39  ;;  %v332_v46 = vadd.f32 %v1153_v33, %v237_v44  ;;  %v239_v47 = vpop.f32.mrb[3].mxu0  ;;  %v722_v49 = vmul.f32 -1.442695, %v334_v41  ;;  %v385_v38 = vld [vmem:[#allocation5 + $0x8] sm:$0xff] }
 0x1a4   :  { %v718_v48 = vmul.f32 -1.442695, %v307_v43  ;;  %v333_v50 = vadd.f32 %v1153_v33, %v239_v47 }
 0x1a5   :  { %770 = vpow2.f32 %v717_v45  ;;  %v720_v51 = vmul.f32 -1.442695, %v332_v46 }
 0x1a6   :  { %772 = vpow2.f32 %v718_v48  ;;  %v294_v52 = vpop.f32.mrb[4].mxu1  ;;  %v721_v53 = vmul.f32 -1.442695, %v333_v50 }
 0x1a7   :  { %v296_v54 = vpop.f32.mrb[5].mxu1  ;;  %774 = vpow2.f32 %v722_v49  ;;  %v360_v14 = vadd.f32 %v1163_v10, %v294_v52 }
 0x1a8   :  { %v297_v55 = vpop.f32.mrb[6].mxu1  ;;  %776 = vpow2.f32 %v720_v51 }
 0x1a9   :  { %v299_v56 = vpop.f32.mrb[7].mxu1  ;;  %778 = vpow2.f32 %v721_v53  ;;  %v368_v12 = vadd.f32 %v1161_v7, %v297_v55 }
 0x1aa   :  { %v243_v57 = vpop.f32.mrb[4].mxu0 }
 0x1ab   :  { %v245_v58 = vpop.f32.mrb[5].mxu0  ;;  %v358_v18 = vadd.f32 %v1163_v10, %v243_v57 }
 0x1ac   :  { %v247_v59 = vpop.f32.mrb[6].mxu0  ;;  %v359_v20 = vadd.f32 %v1163_v10, %v245_v58 }
 0x1ad   :  { %v769_v60 = vpop.eup %768  ;;  %v249_v61 = vpop.f32.mrb[7].mxu0  ;;  %v366_v13 = vadd.f32 %v1161_v7, %v247_v59 }
 0x1ae   :  { %v320_v62 = vadd.f32 1.0, %v769_v60  ;;  %v367_v16 = vadd.f32 %v1161_v7, %v249_v61 }
 0x1af   :  { %v771_v63 = vpop.eup %770 }
 0x1b0   :  { %v773_v1 = vpop.eup %772  ;;  %780 = vrcp.f32 %v320_v62  ;;  %v318_v2 = vadd.f32 1.0, %v771_v63 }
 0x1b1   :  { %v319_v3 = vadd.f32 1.0, %v773_v1  ;;  %v775_v5 = vpop.eup %774 }
 0x1b2   :  { %782 = vrcp.f32 %v318_v2  ;;  %v777_v6 = vpop.eup %776  ;;  %v346_v9 = vadd.f32 1.0, %v775_v5 }
 0x1b3   :  { %784 = vrcp.f32 %v319_v3  ;;  %v779_v8 = vpop.eup %778  ;;  %v344_v11 = vadd.f32 1.0, %v777_v6 }
 0x1b4   :  { %v345_v4 = vadd.f32 1.0, %v779_v8  ;;  %786 = vrcp.f32 %v346_v9 }
 0x1b5   :  { %788 = vrcp.f32 %v344_v11 }
 0x1b6   :  { %790 = vrcp.f32 %v345_v4 }
 0x1ba   :  { %v781_v15 = vpop.eup %780 }
 0x1bb   :  { %v371_v17 = vmul.f32 %v781_v15, %v368_v12 }
 0x1bc   :  { %v783_v19 = vpop.eup %782 }
 0x1bd   :  { %v785_v21 = vpop.eup %784  ;;  %v369_v22 = vmul.f32 %v783_v19, %v366_v13  ;;  %v374_v23 = vadd.f32 %v371_v17, %v360_v14 }
 0x1be   :  { %v370_v24 = vmul.f32 %v785_v21, %v367_v16  ;;  %v787_v27 = vpop.eup %786 }
 0x1bf   :  { %v372_v25 = vadd.f32 %v369_v22, %v358_v18  ;;  %792 = vtanh.f32 %v374_v23  ;;  %v789_v28 = vpop.eup %788  ;;  %v380_v31 = vsub.f32 1.0, %v787_v27  ;;  %v389_v34 = vmul.f32 %v787_v27, %v386_v29 }
 0x1c0   :  { %v373_v26 = vadd.f32 %v370_v24, %v359_v20  ;;  %v791_v30 = vpop.eup %790  ;;  %v378_v32 = vsub.f32 1.0, %v789_v28  ;;  %v387_v42 = vmul.f32 %v789_v28, %v384_v36 }
 0x1c1   :  { %794 = vtanh.f32 %v372_v25  ;;  %v379_v37 = vsub.f32 1.0, %v791_v30  ;;  %v388_v45 = vmul.f32 %v791_v30, %v385_v38 }
 0x1c2   :  { %796 = vtanh.f32 %v373_v26 }
 0x1c9   :  { %v793_v35 = vpop.eup %792 }
 0x1ca   :  { %v383_v39 = vmul.f32 %v793_v35, %v380_v31 }
 0x1cb   :  { %v795_v40 = vpop.eup %794 }
 0x1cc   :  { %v797_v41 = vpop.eup %796  ;;  %v381_v43 = vmul.f32 %v795_v40, %v378_v32  ;;  %v392_v44 = vadd.f32 %v389_v34, %v383_v39 }
 0x1cd   :  { %v382_v46 = vmul.f32 %v797_v41, %v379_v37 }
 0x1ce   :  { %v593_v47 = vpop.f32.mrb[8].mxu1  ;;  %v390_v48 = vadd.f32 %v387_v42, %v381_v43  ;;  %396 = vst.msk [vmem:[#allocation7 + $0x10] sm:$0xff] %vm395_vm9, %v392_v44  ;;  %v674_v44 = vld [vmem:[#allocation5 + $0x28] sm:$0xff] }
 0x1cf   :  { %v610_v49 = vadd.f32 %v593_v47, %v1151_v0  ;;  %v595_v50 = vpop.f32.mrb[9].mxu1  ;;  %v391_v51 = vadd.f32 %v388_v45, %v382_v46 }
 0x1d0   :  { %v540_v52 = vpop.f32.mrb[8].mxu0  ;;  %v596_v53 = vpop.f32.mrb[10].mxu1  ;;  %393 = vst [vmem:[#allocation7] sm:$0xff] %v390_v48  ;;  %v672_v48 = vld [vmem:[#allocation5 + $0x18] sm:$0xff] }
 0x1d1   :  { %v732_v54 = vmul.f32 -1.442695, %v610_v49  ;;  %v608_v55 = vadd.f32 %v540_v52, %v1151_v0  ;;  %v542_v56 = vpop.f32.mrb[9].mxu0  ;;  %v598_v57 = vpop.f32.mrb[11].mxu1  ;;  %394 = vst [vmem:[#allocation7 + $0x8] sm:$0xff] %v391_v51  ;;  %v631_v58 = vadd.f32 %v596_v53, %v1153_v33  ;;  %v673_v52 = vld [vmem:[#allocation5 + $0x20] sm:$0xff] }
 0x1d2   :  { %v609_v59 = vadd.f32 %v542_v56, %v1151_v0  ;;  %v544_v60 = vpop.f32.mrb[10].mxu0 }
 0x1d3   :  { %798 = vpow2.f32 %v732_v54  ;;  %v730_v61 = vmul.f32 -1.442695, %v608_v55  ;;  %v546_v62 = vpop.f32.mrb[11].mxu0  ;;  %v629_v1 = vadd.f32 %v544_v60, %v1153_v33  ;;  %v735_v3 = vmul.f32 -1.442695, %v631_v58 }
 0x1d4   :  { %v731_v63 = vmul.f32 -1.442695, %v609_v59  ;;  %v630_v2 = vadd.f32 %v546_v62, %v1153_v33 }
 0x1d5   :  { %800 = vpow2.f32 %v730_v61  ;;  %v733_v8 = vmul.f32 -1.442695, %v629_v1 }
 0x1d6   :  { %v601_v5 = vpop.f32.mrb[12].mxu1  ;;  %802 = vpow2.f32 %v731_v63  ;;  %v734_v12 = vmul.f32 -1.442695, %v630_v2 }
 0x1d7   :  { %v603_v6 = vpop.f32.mrb[13].mxu1  ;;  %804 = vpow2.f32 %v735_v3  ;;  %v652_v28 = vadd.f32 %v601_v5, %v1163_v10 }
 0x1d8   :  { %v550_v9 = vpop.f32.mrb[12].mxu0  ;;  %v604_v11 = vpop.f32.mrb[14].mxu1  ;;  %806 = vpow2.f32 %v733_v8 }
 0x1d9   :  { %v552_v4 = vpop.f32.mrb[13].mxu0  ;;  %v606_v0 = vpop.f32.mrb[15].mxu1  ;;  %808 = vpow2.f32 %v734_v12  ;;  %v655_v25 = vadd.f32 %v604_v11, %v1161_v7  ;;  %v650_v32 = vadd.f32 %v550_v9, %v1163_v10 }
 0x1da   :  { %v554_v13 = vpop.f32.mrb[14].mxu0  ;;  %v651_v38 = vadd.f32 %v552_v4, %v1163_v10 }
 0x1db   :  { %v556_v14 = vpop.f32.mrb[15].mxu0  ;;  %v653_v29 = vadd.f32 %v554_v13, %v1161_v7 }
 0x1dc   :  { %v654_v35 = vadd.f32 %v556_v14, %v1161_v7 }
 0x1dd   :  { %v799_v15 = vpop.eup %798 }
 0x1de   :  { %v622_v16 = vadd.f32 1.0, %v799_v15 }
 0x1df   :  { %v801_v17 = vpop.eup %800 }
 0x1e0   :  { %810 = vrcp.f32 %v622_v16  ;;  %v620_v33 = vadd.f32 1.0, %v801_v17  ;;  %v803_v18 = vpop.eup %802 }
 0x1e1   :  { %v621_v19 = vadd.f32 1.0, %v803_v18  ;;  %v805_v20 = vpop.eup %804 }
 0x1e2   :  { %812 = vrcp.f32 %v620_v33  ;;  %v807_v21 = vpop.eup %806  ;;  %v643_v23 = vadd.f32 1.0, %v805_v20 }
 0x1e3   :  { %814 = vrcp.f32 %v621_v19  ;;  %v809_v22 = vpop.eup %808  ;;  %v641_v24 = vadd.f32 1.0, %v807_v21 }
 0x1e4   :  { %v642_v27 = vadd.f32 1.0, %v809_v22  ;;  %816 = vrcp.f32 %v643_v23 }
 0x1e5   :  { %818 = vrcp.f32 %v641_v24 }
 0x1e6   :  { %820 = vrcp.f32 %v642_v27 }
 0x1ea   :  { %v811_v26 = vpop.eup %810 }
 0x1eb   :  { %v658_v30 = vmul.f32 %v811_v26, %v655_v25 }
 0x1ec   :  { %v813_v31 = vpop.eup %812 }
 0x1ed   :  { %v656_v34 = vmul.f32 %v813_v31, %v653_v29  ;;  %v661_v36 = vadd.f32 %v658_v30, %v652_v28  ;;  %v815_v37 = vpop.eup %814 }
 0x1ee   :  { %v657_v40 = vmul.f32 %v815_v37, %v654_v35  ;;  %v817_v42 = vpop.eup %816 }
 0x1ef   :  { %v659_v39 = vadd.f32 %v656_v34, %v650_v32  ;;  %822 = vtanh.f32 %v661_v36  ;;  %v819_v43 = vpop.eup %818  ;;  %v667_v46 = vsub.f32 1.0, %v817_v42  ;;  %v677_v49 = vmul.f32 %v817_v42, %v674_v44 }
 0x1f0   :  { %v660_v41 = vadd.f32 %v657_v40, %v651_v38  ;;  %v821_v45 = vpop.eup %820  ;;  %v665_v7 = vsub.f32 1.0, %v819_v43  ;;  %v675_v53 = vmul.f32 %v819_v43, %v672_v48 }
 0x1f1   :  { %824 = vtanh.f32 %v659_v39  ;;  %v666_v10 = vsub.f32 1.0, %v821_v45  ;;  %v676_v57 = vmul.f32 %v821_v45, %v673_v52 }
 0x1f2   :  { %826 = vtanh.f32 %v660_v41 }
 0x1f9   :  { %v823_v47 = vpop.eup %822 }
 0x1fa   :  { %v670_v50 = vmul.f32 %v823_v47, %v667_v46 }
 0x1fb   :  { %v825_v51 = vpop.eup %824 }
 0x1fc   :  { %v668_v54 = vmul.f32 %v825_v51, %v665_v7  ;;  %v680_v55 = vadd.f32 %v677_v49, %v670_v50  ;;  %v827_v56 = vpop.eup %826 }
 0x1fd   :  { %v669_v58 = vmul.f32 %v827_v56, %v666_v10 }
 0x1fe   :  { %v678_v59 = vadd.f32 %v675_v53, %v668_v54  ;;  %684 = vst.msk [vmem:[#allocation7 + $0x28] sm:$0xff] %vm395_vm9, %v680_v55 }
 0x1ff   :  { %v679_v60 = vadd.f32 %v676_v57, %v669_v58 }
 0x200   :  { %682 = vst [vmem:[#allocation7 + $0x18] sm:$0xff] %v678_v59 }
 0x201   :  { %683 = vst [vmem:[#allocation7 + $0x20] sm:$0xff] %v679_v60 }
 0x202   :  { %883 = shalt.err (!%p880_p6)
}
 0x203   :  { %s884_s1 = scalar_lea.hbm %s1204_s4, 768 }
 0x204   :  { %p885_p7 = scmp.ne.s32.totalorder %s1204_s4, %s884_s1  ;;  %p888_p8 = scmp.lt.u32.totalorder %s884_s1, %s1204_s4 }
 0x206   :  { %p890_p9 = pnand %p888_p8, %p885_p7 }
 0x208   :  { %893 = shalt.err (!%p890_p9)
}
 0x209   :  { %696 = dma.vmem_to_hbm [thread:$0]  %s691_s12, 768, %s1204_s4, [#allocation4], %s904_s0, %s904_s0, %s905_s13  }
 0x20a   :  { %898 = dma.done.wait [#allocation4], 768  }
 0x20b   :  { %899 = vsyncadd [#allocation4], 4294966528 }
 0x20c   :  { %700 = vsyncpa [#allocation3], 1 }
 0x20d   :  { %701 = vsyncpa [#allocation6], 1 }
 0x20e   :  { %702 = vsyncpa [#allocation4], 1 }

</bundles_post_ra>
